<compile_context>
chip_gen: v6e
topology: v6e:2x2x1
jax: 0.10.0
libtpu: 0.0.40
codegen_flags: <defaults>
</compile_context>

<pallas_src>
import functools

import jax
import jax.numpy as jnp
from jax import lax
from jax.experimental import pallas as pl
from jax.experimental.pallas import tpu as pltpu

LANES = 128
SUBLANES = 8          # rows of the per-step (8,128) partial-sum block
CHUNK_ROWS = 64       # in-kernel chunk: (64,128) f32 = 8 vregs per intermediate
MIN_TILE_ROWS = 512   # ~85%-of-roofline block size
MAX_TILE_ROWS = 2048  # (2048,128) f32 = 1 MiB/buffer -> 4 MiB double-buffered inputs
MIN_GRID_STEPS = 8    # keep DMA pipeline + (v7x) 2-TC sharding fed for mid-size inputs


def _focal_loss_kernel(x_ref, y_ref, psum_ref, *, gamma, hard_targets,
                       tile_rows, chunk_rows, n_valid, needs_mask):
    """One grid step over a (tile_rows, 128) slab -> one (8, 128) partial-sum block.

    alpha and the 1/N mean normalization are folded into the final scalar scale in
    the wrapper, so per-element work is just weight(pt) * bce.
    """
    num_chunks = tile_rows // chunk_rows

    def chunk_partial(row0):
        x = x_ref[pl.ds(row0, chunk_rows), :].astype(jnp.float32)
        y = y_ref[pl.ds(row0, chunk_rows), :].astype(jnp.float32)

        # Numerically stable BCE-with-logits (matches torch; valid for y in [0,1]):
        #   bce = max(x, 0) - x*y + log1p(exp(-|x|))
        e = jnp.exp(-jnp.abs(x))
        bce = jnp.maximum(x, 0.0) - x * y + jnp.log1p(e)

        if hard_targets:
            # For y in {0,1}: pt = exp(-bce) is exactly the matched sigmoid prob, so
            #   1 - pt = (e if sign(x) "agrees" with y else 1) / (1 + e)
            # This drops one EUP transcendental (no second exp) and is exact at pt~1.
            num = jnp.where(x >= 0.0,
                            jnp.where(y > 0.5, e, 1.0),
                            jnp.where(y > 0.5, 1.0, e))
            one_minus_pt = num / (1.0 + e)   # exact divide (approx rcp hurts accuracy)
        else:
            # Soft labels: exact 1 - exp(-bce) without cancellation for small bce.
            one_minus_pt = -jnp.expm1(-bce)

        if float(gamma).is_integer():
            # Integer pow -> VPU multiplies; avoids exp(gamma*log(1-pt)) and log(0).
            w = lax.integer_pow(one_minus_pt, int(gamma))
        else:
            w = one_minus_pt ** jnp.float32(gamma)

        focal = w * bce

        if needs_mask:
            # Ragged tail / partial-edge-block garbage: zero every element whose
            # global flat index is >= n_valid.  (int32 indexing: fine below ~2^31 elems.)
            tile_base = pl.program_id(0) * (tile_rows * LANES)
            rows_i = lax.broadcasted_iota(jnp.int32, (chunk_rows, LANES), 0)
            cols_i = lax.broadcasted_iota(jnp.int32, (chunk_rows, LANES), 1)
            gidx = tile_base + (row0 + rows_i) * LANES + cols_i
            focal = jnp.where(gidx < n_valid, focal, 0.0)

        return focal

    if num_chunks == 1:
        acc = chunk_partial(0)
    elif num_chunks <= 8:
        # Short static loop: fully visible to the scheduler.
        acc = chunk_partial(0)
        for c in range(1, num_chunks):
            acc = acc + chunk_partial(c * chunk_rows)
    else:
        def body(c, acc):
            row0 = pl.multiple_of(c * chunk_rows, chunk_rows)
            return acc + chunk_partial(row0)
        acc = lax.fori_loop(1, num_chunks, body, chunk_partial(0))

    # (chunk_rows,128) -> (chunk_rows//8, 8, 128) keeps every (8,128) tile intact
    # (layout-preserving regroup); summing the leading axis is pure VPU vreg adds.
    psum_ref[...] = jnp.sum(
        acc.reshape(chunk_rows // SUBLANES, SUBLANES, LANES), axis=0)


def focal_loss(logits, y, alpha=0.5, gamma=2, hard_targets=None):
    assert logits.shape == y.shape
    n_valid = int(logits.size)

    if hard_targets is None:
        # Bool / integer targets are necessarily hard 0/1 labels.
        hard_targets = (y.dtype == jnp.bool_) or jnp.issubdtype(y.dtype, jnp.integer)

    # Stream bool targets as int8 (1 B/elem); do NOT widen to logits dtype.
    if y.dtype == jnp.bool_:
        y = y.astype(jnp.int8)

    # Keep native dtypes in HBM (halves traffic for bf16 logits); upcast in-kernel.
    x_flat = logits.reshape(-1)
    y_flat = y.reshape(-1)

    # Sublane granularity of the narrowest streamed dtype (f32->8, bf16->16, 8-bit->32).
    min_itemsize = min(jnp.dtype(x_flat.dtype).itemsize, jnp.dtype(y_flat.dtype).itemsize)
    sub = max(SUBLANES, 32 // max(1, min_itemsize))

    rows = pl.cdiv(n_valid, LANES)
    rows = pl.cdiv(rows, sub) * sub

    if rows <= MIN_TILE_ROWS:
        # Tiny input: single grid step covering everything.
        tile_rows = rows
        chunk_rows = CHUNK_ROWS if (tile_rows % CHUNK_ROWS == 0) else tile_rows
        grid_steps = 1
    else:
        # At least MIN_GRID_STEPS steps (pipelining + v7x 2-TC sharding), tile rows a
        # multiple of CHUNK_ROWS, clamped to [MIN_TILE_ROWS, MAX_TILE_ROWS] (v5e VMEM).
        t = pl.cdiv(pl.cdiv(rows, MIN_GRID_STEPS), CHUNK_ROWS) * CHUNK_ROWS
        tile_rows = max(MIN_TILE_ROWS, min(MAX_TILE_ROWS, t))
        chunk_rows = CHUNK_ROWS
        grid_steps = pl.cdiv(rows, tile_rows)

    padded_len = rows * LANES
    pad = padded_len - n_valid
    # Mask needed if there is a ragged tail OR the last grid block is partial
    # (Pallas edge blocks may contain garbage rows) -- compiled out otherwise.
    needs_mask = (pad != 0) or (rows % tile_rows != 0)
    if pad:
        # Zero-pad only to present a (rows,128) view; contributions are killed by the
        # in-kernel mask (no sentinel values needed).
        # TODO(synk): for large ragged inputs this is still one extra HBM pass; a 1-D
        # element-block path would remove it entirely.
        x_flat = jnp.pad(x_flat, (0, pad))
        y_flat = jnp.pad(y_flat, (0, pad))

    x2d = x_flat.reshape(rows, LANES)
    y2d = y_flat.reshape(rows, LANES)

    kernel = functools.partial(
        _focal_loss_kernel, gamma=gamma, hard_targets=bool(hard_targets),
        tile_rows=tile_rows, chunk_rows=chunk_rows,
        n_valid=n_valid, needs_mask=needs_mask)

    # Per-grid-step (8,128) partial-sum blocks; final reduce + alpha/N scale in JAX.
    psums = pl.pallas_call(
        kernel,
        out_shape=jax.ShapeDtypeStruct((grid_steps * SUBLANES, LANES), jnp.float32),
        grid_spec=pltpu.PrefetchScalarGridSpec(
            num_scalar_prefetch=0,
            grid=(grid_steps,),
            in_specs=[
                pl.BlockSpec((tile_rows, LANES), lambda i: (i, 0)),
                pl.BlockSpec((tile_rows, LANES), lambda i: (i, 0)),
            ],
            out_specs=pl.BlockSpec((SUBLANES, LANES), lambda i: (i, 0)),
        ),
        # TODO(synk): verify in the Mosaic dump / xprof that "parallel" shards this
        # axis across both v7x TensorCores; if not, add an explicit core-parallel axis.
        compiler_params=pltpu.CompilerParams(
            dimension_semantics=("parallel",),
        ),
    )(x2d, y2d)

    return (jnp.float32(alpha) / jnp.float32(n_valid)) * jnp.sum(psums)


def _focal_ref(logits, y, alpha, gamma):
    """Pure-JAX reference: same math as the PyTorch module."""
    x = logits.astype(jnp.float32)
    t = y.astype(jnp.float32)
    bce = jnp.maximum(x, 0.0) - x * t + jnp.log1p(jnp.exp(-jnp.abs(x)))
    pt = jnp.exp(-bce)
    return jnp.mean(alpha * (1.0 - pt) ** gamma * bce)


if __name__ == "__main__":
    key = jax.random.PRNGKey(0)
    k1, k2, k3, k4, k5 = jax.random.split(key, 5)

    # Small segmentation-style shapes: NCHW = [2, 4, 16, 16]
    shape = (2, 4, 16, 16)
    logits = jax.random.normal(k1, shape, dtype=jnp.float32)

    # 1) Hard 0/1 float targets (matches the torch BCE-with-logits contract),
    #    exercising the reduced-transcendental hard-target path.
    y_hard = (jax.random.uniform(k2, shape) > 0.5).astype(jnp.float32)
    loss1 = focal_loss(logits, y_hard, alpha=0.5, gamma=2, hard_targets=True)
    jax.block_until_ready(loss1)
    ref1 = _focal_ref(logits, y_hard, 0.5, 2)
    assert jnp.allclose(loss1, ref1, rtol=1e-5, atol=1e-6), (loss1, ref1)

    # 2) Soft targets in [0,1] (exp(-bce)/expm1 path).
    y_soft = jax.random.uniform(k3, shape, dtype=jnp.float32)
    loss2 = focal_loss(logits, y_soft, alpha=0.5, gamma=2)
    ref2 = _focal_ref(logits, y_soft, 0.5, 2)
    assert jnp.allclose(loss2, ref2, rtol=1e-5, atol=1e-6), (loss2, ref2)

    # 3) Ragged size + boolean targets: exercises int8 streaming and the in-kernel mask.
    shape3 = (3, 5, 7)
    logits3 = jax.random.normal(k4, shape3, dtype=jnp.float32)
    y3_bool = jax.random.uniform(k5, shape3) > 0.5
    loss3 = focal_loss(logits3, y3_bool, alpha=0.25, gamma=2)
    ref3 = _focal_ref(logits3, y3_bool, 0.25, 2)
    assert jnp.allclose(loss3, ref3, rtol=1e-5, atol=1e-6), (loss3, ref3)

    print("KERNEL_OK")
</pallas_src>

<mosaic_0001>
module attributes {stable_mosaic.version = 11 : i64} {
  func.func @_focal_loss_kernel(%arg0: i32, %arg1: memref<16x128xf32, #tpu.memory_space<vmem>>, %arg2: memref<16x128xf32, #tpu.memory_space<vmem>>, %arg3: memref<8x128xf32, #tpu.memory_space<vmem>>) attributes {dimension_semantics = [#tpu.dimension_semantics<parallel>], iteration_bounds = array<i64: 1>, scalar_prefetch = 0 : i64, scratch_operands = 0 : i64, tpu.core_type = #tpu.core_type<tc>, window_params = [{transform_indices = @transform_0, window_bounds = array<i64: 16, 128>}, {transform_indices = @transform_1, window_bounds = array<i64: 16, 128>}, {transform_indices = @transform_2, window_bounds = array<i64: 8, 128>}]} {
    %c0 = arith.constant 0 : index
    %c0_0 = arith.constant 0 : index
    %0 = vector.load %arg1[%c0, %c0_0] : memref<16x128xf32, #tpu.memory_space<vmem>>, vector<16x128xf32>
    %c0_1 = arith.constant 0 : index
    %c0_2 = arith.constant 0 : index
    %1 = vector.load %arg2[%c0_1, %c0_2] : memref<16x128xf32, #tpu.memory_space<vmem>>, vector<16x128xf32>
    %2 = math.absf %0 : vector<16x128xf32>
    %cst = arith.constant 0.000000e+00 : f32
    %3 = vector.broadcast %cst : f32 to vector<16x128xf32>
    %4 = arith.subf %3, %2 : vector<16x128xf32>
    %5 = math.exp %4 : vector<16x128xf32>
    %cst_3 = arith.constant 0.000000e+00 : f32
    %6 = vector.broadcast %cst_3 : f32 to vector<16x128xf32>
    %7 = arith.maximumf %0, %6 : vector<16x128xf32>
    %8 = arith.mulf %0, %1 : vector<16x128xf32>
    %9 = arith.subf %7, %8 : vector<16x128xf32>
    %10 = math.log1p %5 : vector<16x128xf32>
    %11 = arith.addf %9, %10 : vector<16x128xf32>
    %cst_4 = arith.constant 0.000000e+00 : f32
    %12 = vector.broadcast %cst_4 : f32 to vector<16x128xf32>
    %13 = arith.cmpf oge, %0, %12 : vector<16x128xf32>
    %cst_5 = arith.constant 5.000000e-01 : f32
    %14 = vector.broadcast %cst_5 : f32 to vector<16x128xf32>
    %15 = arith.cmpf ogt, %1, %14 : vector<16x128xf32>
    %cst_6 = arith.constant 1.000000e+00 : f32
    %16 = vector.broadcast %cst_6 : f32 to vector<16x128xf32>
    %17 = arith.select %15, %5, %16 : vector<16x128xi1>, vector<16x128xf32>
    %cst_7 = arith.constant 5.000000e-01 : f32
    %18 = vector.broadcast %cst_7 : f32 to vector<16x128xf32>
    %19 = arith.cmpf ogt, %1, %18 : vector<16x128xf32>
    %cst_8 = arith.constant 1.000000e+00 : f32
    %20 = vector.broadcast %cst_8 : f32 to vector<16x128xf32>
    %21 = arith.select %19, %20, %5 : vector<16x128xi1>, vector<16x128xf32>
    %22 = arith.select %13, %17, %21 : vector<16x128xi1>, vector<16x128xf32>
    %cst_9 = arith.constant 1.000000e+00 : f32
    %23 = vector.broadcast %cst_9 : f32 to vector<16x128xf32>
    %24 = arith.addf %23, %5 : vector<16x128xf32>
    %25 = arith.divf %22, %24 : vector<16x128xf32>
    %26 = arith.mulf %25, %25 : vector<16x128xf32>
    %27 = arith.mulf %26, %11 : vector<16x128xf32>
    %28 = vector.shape_cast %27 : vector<16x128xf32> to vector<2x8x128xf32>
    %cst_10 = arith.constant dense<0.000000e+00> : vector<8x128xf32>
    %29 = vector.multi_reduction <add>, %28, %cst_10 [0] : vector<2x8x128xf32> to vector<8x128xf32>
    %c0_11 = arith.constant 0 : index
    %c0_12 = arith.constant 0 : index
    %30 = vector.load %arg3[%c0_11, %c0_12] : memref<8x128xf32, #tpu.memory_space<vmem>>, vector<8x128xf32>
    tpu.vector_store %arg3[%c0_11, %c0_12], %29 {strides = array<i32>} : memref<8x128xf32, #tpu.memory_space<vmem>>, vector<8x128xf32>,
    return
  }
  func.func @transform_0(%arg0: i32) -> (i32, i32) {
    %c0_i32 = arith.constant 0 : i32
    %c0_i32_0 = arith.constant 0 : i32
    return %arg0, %c0_i32 : i32, i32
  }
  func.func @transform_1(%arg0: i32) -> (i32, i32) {
    %c0_i32 = arith.constant 0 : i32
    %c0_i32_0 = arith.constant 0 : i32
    return %arg0, %c0_i32 : i32, i32
  }
  func.func @transform_2(%arg0: i32) -> (i32, i32) {
    %c0_i32 = arith.constant 0 : i32
    %c0_i32_0 = arith.constant 0 : i32
    return %arg0, %c0_i32 : i32, i32
  }
}

</mosaic_0001>

<bundles_post_ra>
// kernel: tpu_custom_call.1
= control target key start
LH: loop header
LB: loop body
LE: loop exit
PB: predicated region body
PF: predicated region fallthrough
CT: control target
= control target key end

     0   :  { %7 = vsyncpa [#allocation3], 0  ;;  %s228_s0 = inlined_call_operand.hbm [shape: f32[16,128], index: 0, kind: input, shape index: {}]   ;;  %s229_s1 = inlined_call_operand.hbm [shape: f32[16,128], index: 1, kind: input, shape index: {}]   ;;  %s230_s2 = inlined_call_operand.hbm [shape: f32[8,128], index: 2, kind: output, shape index: {}]  }
   0x1   :  { %8 = vsyncpa [#allocation6], 0 }
   0x2   :  { %9 = vsyncpa [#allocation4], 0  ;;  %s199_s9 = smov [#allocation2]  }
   0x3   :  { %s15_s10 = sshll.u32 %s199_s9, 4  ;;  %s16_s10 = int_to_ptr.vmem [resolvable:$true] %s15_s10 }
   0x4   :  { %s141_s11 = scalar_lea.vmem %s16_s10, 256  ;;  %p146_p1 = scmp.lt.s32.totalorder %s16_s10, %s16_s10 }
   0x5   :  { %p142_p0 = scmp.ne.s32.totalorder %s16_s10, %s141_s11  ;;  %p147_p2 = scmp.lt.s32.totalorder %s141_s11, %s141_s11 }
   0x7   :  { %p148_p3 = por %p147_p2, %p146_p1 }
   0x9   :  { %p149_p4 = pnand %p148_p3, %p142_p0 }
   0xb   :  { %152 = shalt.err (!%p149_p4)
}
   0xc   :  { %s200_s12 = smov 128   ;;  %s201_s13 = smov 8  }
   0xd   :  { %21 = dma.hbm_to_vmem [thread:$0]  %s228_s0, 256, %s16_s10, [#allocation3], %s200_s12, %s200_s12, %s201_s13  }
   0xe   :  { %s202_s16 = smov [#allocation5]  }
   0xf   :  { %s27_s17 = sshll.u32 %s202_s16, 4  ;;  %s28_s17 = int_to_ptr.vmem [resolvable:$true] %s27_s17 }
  0x10   :  { %s161_s18 = scalar_lea.vmem %s28_s17, 256  ;;  %p166_p6 = scmp.lt.s32.totalorder %s28_s17, %s28_s17 }
  0x11   :  { %p162_p5 = scmp.ne.s32.totalorder %s28_s17, %s161_s18  ;;  %p167_p7 = scmp.lt.s32.totalorder %s161_s18, %s161_s18 }
  0x13   :  { %p168_p8 = por %p167_p7, %p166_p6 }
  0x15   :  { %p169_p9 = pnand %p168_p8, %p162_p5 }
  0x17   :  { %172 = shalt.err (!%p169_p9)
}
  0x18   :  { %33 = dma.hbm_to_vmem [thread:$0]  %s229_s1, 256, %s28_s17, [#allocation6], %s200_s12, %s200_s12, %s201_s13  }
  0x19   :  { %193 = dma.done.wait [#allocation3], 256  }
  0x1a   :  { %194 = vsyncadd [#allocation3], 4294967040 }
  0x1b   :  { %195 = dma.done.wait [#allocation6], 256  }
  0x1c   :  { %196 = vsyncadd [#allocation6], 4294967040  ;;  %v40_v0 = vld [vmem:[#allocation2] sm:$0xff]  ;;  %v41_v1 = vld [vmem:[#allocation2 + $0x8] sm:$0xff]  ;;  %s203_s0 = smov [#allocation7]  }
  0x1d   :  { %v44_v2 = vand.u32 2147483647, %v40_v0  ;;  %v45_v3 = vand.u32 2147483647, %v41_v1  ;;  %v42_v12 = vld [vmem:[#allocation5] sm:$0xff]  ;;  %v43_v14 = vld [vmem:[#allocation5 + $0x8] sm:$0xff] }
  0x1e   :  { %vm80_vm0 = vcmp.gt.f32.partialorder %v42_v12, 0.5  ;;  %v52_v16 = vmax.f32 %v40_v0, 0.0  ;;  %v54_v17 = vmul.f32 %v42_v12, %v40_v0  ;;  %vm81_vm1 = vcmp.gt.f32.partialorder %v43_v14, 0.5  ;;  %s106_s1 = sshll.u32 %s203_s0, 4  ;;  %s107_s1 = int_to_ptr.vmem [resolvable:$true] %s106_s1 }
  0x1f   :  { %v46_v4 = vsub.f32 0.0, %v44_v2  ;;  %v47_v5 = vsub.f32 0.0, %v45_v3  ;;  %v53_v19 = vmax.f32 %v41_v1, 0.0  ;;  %v55_v20 = vmul.f32 %v43_v14, %v41_v1  ;;  %s173_s21 = scalar_lea.vmem %s107_s1, 128  ;;  %p178_p11 = scmp.lt.s32.totalorder %s107_s1, %s107_s1 }
  0x20   :  { %vm78_vm2 = vcmp.ge.f32.partialorder %v40_v0, 0.0  ;;  %vm79_vm3 = vcmp.ge.f32.partialorder %v41_v1, 0.0  ;;  %v56_v30 = vsub.f32 %v52_v16, %v54_v17  ;;  %p174_p10 = scmp.ne.s32.totalorder %s107_s1, %s173_s21  ;;  %p179_p12 = scmp.lt.s32.totalorder %s173_s21, %s173_s21 }
  0x21   :  { %v48_v6 = vmul.f32 1.442695, %v46_v4  ;;  %v50_v7 = vmul.f32 1.442695, %v47_v5  ;;  %v57_v34 = vsub.f32 %v53_v19, %v55_v20 }
  0x22   :  { %p180_p13 = por %p179_p12, %p178_p11 }
  0x23   :  { %121 = vpow2.f32 %v48_v6 }
  0x24   :  { %123 = vpow2.f32 %v50_v7  ;;  %p181_p0 = pnand %p180_p13, %p174_p10 }
  0x30   :  { %v122_v8 = vpop.eup %121 }
  0x31   :  { %v124_v9 = vpop.eup %123  ;;  %v58_v10 = vadd.f32 1.0, %v122_v8  ;;  %v61_v13 = vmul.f32 -0.5, %v122_v8  ;;  %v64_v21 = vand.u32 2147483647, %v122_v8  ;;  %v82_v24 = vsel %vm80_vm0, %v122_v8, 1.0 }
  0x32   :  { %v67_v11 = vadd.f32 1.0, %v124_v9  ;;  %v70_v15 = vmul.f32 -0.5, %v124_v9  ;;  %v73_v23 = vand.u32 2147483647, %v124_v9  ;;  %v84_v25 = vsel %vm80_vm0, 1.0, %v122_v8 }
  0x33   :  { %125 = vlog2.f32 %v58_v10  ;;  %v62_v18 = vadd.f32 1.0, %v61_v13  ;;  %v83_v26 = vsel %vm81_vm1, %v124_v9, 1.0  ;;  %v85_v27 = vsel %vm81_vm1, 1.0, %v124_v9 }
  0x34   :  { %127 = vlog2.f32 %v67_v11  ;;  %v71_v22 = vadd.f32 1.0, %v70_v15  ;;  %vm65_vm4 = vcmp.lt.f32.partialorder %v64_v21, 0.0004427343  ;;  %v86_v32 = vsel %vm78_vm2, %v82_v24, %v84_v25 }
  0x35   :  { %129 = vrcp.f32 %v58_v10  ;;  %v63_v28 = vmul.f32 %v122_v8, %v62_v18  ;;  %vm74_vm5 = vcmp.lt.f32.partialorder %v73_v23, 0.0004427343  ;;  %v87_v36 = vsel %vm79_vm3, %v83_v26, %v85_v27 }
  0x36   :  { %131 = vrcp.f32 %v67_v11  ;;  %v72_v31 = vmul.f32 %v124_v9, %v71_v22 }
  0x40   :  { %v126_v29 = vpop.eup %125 }
  0x41   :  { %v128_v33 = vpop.eup %127  ;;  %v60_v35 = vmul.f32 0.6931472, %v126_v29 }
  0x42   :  { %v130_v37 = vpop.eup %129  ;;  %v69_v38 = vmul.f32 0.6931472, %v128_v33 }
  0x43   :  { %v132_v39 = vpop.eup %131  ;;  %v66_v40 = vsel %vm65_vm4, %v63_v28, %v60_v35  ;;  %v91_v41 = vmul.f32 %v130_v37, %v86_v32 }
  0x44   :  { %v75_v42 = vsel %vm74_vm5, %v72_v31, %v69_v38  ;;  %v76_v43 = vadd.f32 %v66_v40, %v56_v30  ;;  %v93_v44 = vmul.f32 %v132_v39, %v87_v36 }
  0x45   :  { %v77_v45 = vadd.f32 %v75_v42, %v57_v34  ;;  %v94_v46 = vmul.f32 %v91_v41, %v91_v41 }
  0x46   :  { %v95_v47 = vmul.f32 %v93_v44, %v93_v44 }
  0x47   :  { %v96_v48 = vmul.f32 %v94_v46, %v76_v43 }
  0x48   :  { %v97_v49 = vmul.f32 %v95_v47, %v77_v45 }
  0x4a   :  { %v98_v50 = vadd.f32 %v97_v49, %v96_v48 }
  0x4c   :  { %99 = vst [vmem:[#allocation7] sm:$0xff] %v98_v50 }
  0x4d   :  { %184 = shalt.err (!%p181_p0)
}
  0x4e   :  { %109 = dma.vmem_to_hbm [thread:$0]  %s107_s1, 128, %s230_s2, [#allocation4]  }
  0x4f   :  { %197 = dma.done.wait [#allocation4], 128  }
  0x50   :  { %198 = vsyncadd [#allocation4], 4294967168 }
  0x51   :  { %113 = vsyncpa [#allocation3], 1 }
  0x52   :  { %114 = vsyncpa [#allocation6], 1 }
  0x53   :  { %115 = vsyncpa [#allocation4], 1 }

</bundles_post_ra>
